<compile_context>
chip_gen: v7x
topology: tpu7x:2x2x1
jax: 0.10.0
libtpu: 0.0.40
codegen_flags: <defaults>
</compile_context>

<pallas_src>
import jax
import jax.numpy as jnp
from jax.experimental import pallas as pl
from jax.experimental.pallas import tpu as pltpu


def adda_predictor_kernel(xt_ref, w_ref, b_ref, o_ref):
    # xt_ref: (E, bb)  -- activation tile, batch on the lane axis
    # w_ref : (C, E)   -- torch nn.Linear weight layout (out_features, in_features)
    # b_ref : (C, 1)   -- bias as a column
    # o_ref : (C, bb)  -- log-probs, classes on sublanes, batch on lanes
    #
    # Logits^T = W @ x^T + b   (MXU, f32 accumulation; bf16 operands go in natively)
    logits = jnp.dot(w_ref[...], xt_ref[...], preferred_element_type=jnp.float32)
    logits = logits + b_ref[...].astype(jnp.float32)

    # Numerically stable log_softmax over the class axis (axis 0 = sublanes).
    m = jnp.max(logits, axis=0, keepdims=True)
    shifted = logits - m
    lse = jnp.log(jnp.sum(jnp.exp(shifted), axis=0, keepdims=True))
    o_ref[...] = (shifted - lse).astype(o_ref.dtype)


# Batch-tile cap: multiple of 128 (lane-dense), ~1.5 MiB of double-buffered tiles at f32,
# safe on v7x's 64 MiB VMEM while keeping per-grid-step overhead (~0.35 us) well amortized.
_BLOCK_B_CAP = 4096


def adda_predictor(x, w, b, *, block_b=None):
    """AddaPredictor forward.

    Args:
      x: (B, E) activations (f32 or bf16).
      w: (C, E) linear weight in torch nn.Linear layout (out_features, in_features).
      b: (C,)   linear bias.
      block_b: optional batch tile size (multiple of 128 recommended; halve on v7x if
               you push the cap much higher).

    Returns:
      (B, C) log-probabilities (log_softmax over the class dim), matching the module.
    """
    B, E = x.shape
    C, E_w = w.shape
    assert E == E_w, "weight/in-feature mismatch"

    if block_b is None:
        block_b = B if B <= _BLOCK_B_CAP else _BLOCK_B_CAP

    # Feature-major (lane-dense) layout for the kernel; transposes are wrapper-side
    # layout plumbing (a real consumer could read the (C, B) slab directly).
    x_t = jnp.transpose(x)           # (E, B)
    b_col = b.reshape(C, 1)          # (C, 1)
    out_dtype = x.dtype

    grid = (pl.cdiv(B, block_b),)

    out_t = pl.pallas_call(
        adda_predictor_kernel,
        out_shape=jax.ShapeDtypeStruct((C, B), out_dtype),
        grid_spec=pltpu.PrefetchScalarGridSpec(
            num_scalar_prefetch=0,
            grid=grid,
            in_specs=[
                pl.BlockSpec((E, block_b), lambda i: (0, i)),  # activation tile (batch on lanes)
                pl.BlockSpec((C, E), lambda i: (0, 0)),        # full weight (tiny, resident)
                pl.BlockSpec((C, 1), lambda i: (0, 0)),        # bias column
            ],
            out_specs=pl.BlockSpec((C, block_b), lambda i: (0, i)),
        ),
        compiler_params=pltpu.CompilerParams(
            dimension_semantics=("parallel",),   # batch tiles are independent (megacore-shardable)
            vmem_limit_bytes=32 * 1024 * 1024,   # safe on all generations; tiles use ~1.5 MiB
        ),
    )(x_t, w, b_col)

    # Back to the module's (B, C) layout / log_softmax(dim=1) semantics.
    return jnp.transpose(out_t)


def reference(x, w, b):
    logits = x @ w.T + b
    return jax.nn.log_softmax(logits, axis=1)


if __name__ == "__main__":
    # Small shapes consistent with the module: batch=8, emb_dim=32, ncls_source=16
    batch, emb_dim, ncls_source = 8, 32, 16

    key = jax.random.PRNGKey(0)
    kx, kw, kb = jax.random.split(key, 3)

    # Deterministic parameter init mimicking nn.Linear defaults (uniform +/- 1/sqrt(emb_dim)),
    # stored in torch layout: weight (C, E), bias (C,).
    bound = 1.0 / (emb_dim ** 0.5)
    w = jax.random.uniform(kw, (ncls_source, emb_dim), jnp.float32, -bound, bound)
    b = jax.random.uniform(kb, (ncls_source,), jnp.float32, -bound, bound)

    x = jax.random.normal(kx, (batch, emb_dim), jnp.float32)

    out = adda_predictor(x, w, b)
    out = jax.block_until_ready(out)

    ref = reference(x, w, b)
    assert out.shape == (batch, ncls_source)
    assert jnp.allclose(out, ref, atol=1e-5, rtol=1e-5), "mismatch vs reference"

    print("KERNEL_OK")
</pallas_src>

<mosaic_0001>
module attributes {stable_mosaic.version = 11 : i64} {
  func.func @adda_predictor_kernel(%arg0: i32, %arg1: memref<32x8xf32, #tpu.memory_space<vmem>>, %arg2: memref<16x32xf32, #tpu.memory_space<vmem>>, %arg3: memref<16x1xf32, #tpu.memory_space<vmem>>, %arg4: memref<16x8xf32, #tpu.memory_space<vmem>>) attributes {dimension_semantics = [#tpu.dimension_semantics<parallel>], iteration_bounds = array<i64: 1>, scalar_prefetch = 0 : i64, scratch_operands = 0 : i64, tpu.core_type = #tpu.core_type<tc>, window_params = [{transform_indices = @transform_0, window_bounds = array<i64: 32, 8>}, {pipeline_mode = #tpu.pipeline_mode<synchronous>, transform_indices = @transform_1, window_bounds = array<i64: 16, 32>}, {pipeline_mode = #tpu.pipeline_mode<synchronous>, transform_indices = @transform_2, window_bounds = array<i64: 16, 1>}, {transform_indices = @transform_3, window_bounds = array<i64: 16, 8>}]} {
    %c0 = arith.constant 0 : index
    %c0_0 = arith.constant 0 : index
    %0 = vector.load %arg2[%c0, %c0_0] : memref<16x32xf32, #tpu.memory_space<vmem>>, vector<16x32xf32>
    %c0_1 = arith.constant 0 : index
    %c0_2 = arith.constant 0 : index
    %1 = vector.load %arg1[%c0_1, %c0_2] : memref<32x8xf32, #tpu.memory_space<vmem>>, vector<32x8xf32>
    %cst = arith.constant dense<0.000000e+00> : vector<16x8xf32>
    %2 = tpu.matmul %0, %1, %cst {dimension_numbers = #tpu.dot_dimension_numbers<[1], [0], [0], [1], [0, 0, 1, 1], [], []>} : vector<16x32xf32>, vector<32x8xf32>, vector<16x8xf32> -> vector<16x8xf32>
    %c0_3 = arith.constant 0 : index
    %c0_4 = arith.constant 0 : index
    %3 = vector.load %arg3[%c0_3, %c0_4] : memref<16x1xf32, #tpu.memory_space<vmem>>, vector<16x1xf32>
    %4 = vector.broadcast %3 : vector<16x1xf32> to vector<16x8xf32>
    %5 = arith.addf %2, %4 : vector<16x8xf32>
    %cst_5 = arith.constant dense<0xFF800000> : vector<8xf32>
    %6 = vector.multi_reduction <maximumf>, %5, %cst_5 [0] : vector<16x8xf32> to vector<8xf32>
    %7 = vector.shape_cast %6 : vector<8xf32> to vector<1x8xf32>
    %8 = vector.broadcast %7 : vector<1x8xf32> to vector<16x8xf32>
    %9 = arith.subf %5, %8 : vector<16x8xf32>
    %10 = math.exp %9 : vector<16x8xf32>
    %cst_6 = arith.constant dense<0.000000e+00> : vector<8xf32>
    %11 = vector.multi_reduction <add>, %10, %cst_6 [0] : vector<16x8xf32> to vector<8xf32>
    %12 = vector.shape_cast %11 : vector<8xf32> to vector<1x8xf32>
    %13 = math.log %12 : vector<1x8xf32>
    %14 = vector.broadcast %13 : vector<1x8xf32> to vector<16x8xf32>
    %15 = arith.subf %9, %14 : vector<16x8xf32>
    %c0_7 = arith.constant 0 : index
    %c0_8 = arith.constant 0 : index
    %16 = vector.load %arg4[%c0_7, %c0_8] : memref<16x8xf32, #tpu.memory_space<vmem>>, vector<16x8xf32>
    tpu.vector_store %arg4[%c0_7, %c0_8], %15 {strides = array<i32>} : memref<16x8xf32, #tpu.memory_space<vmem>>, vector<16x8xf32>,
    return
  }
  func.func @transform_0(%arg0: i32) -> (i32, i32) {
    %c0_i32 = arith.constant 0 : i32
    %c0_i32_0 = arith.constant 0 : i32
    return %c0_i32, %arg0 : i32, i32
  }
  func.func @transform_1(%arg0: i32) -> (i32, i32) {
    %c0_i32 = arith.constant 0 : i32
    %c0_i32_0 = arith.constant 0 : i32
    %c0_i32_1 = arith.constant 0 : i32
    return %c0_i32, %c0_i32_0 : i32, i32
  }
  func.func @transform_2(%arg0: i32) -> (i32, i32) {
    %c0_i32 = arith.constant 0 : i32
    %c0_i32_0 = arith.constant 0 : i32
    %c0_i32_1 = arith.constant 0 : i32
    return %c0_i32, %c0_i32_0 : i32, i32
  }
  func.func @transform_3(%arg0: i32) -> (i32, i32) {
    %c0_i32 = arith.constant 0 : i32
    %c0_i32_0 = arith.constant 0 : i32
    return %c0_i32, %arg0 : i32, i32
  }
}

</mosaic_0001>

<bundles_post_ra>
// kernel: tpu_custom_call.1
= control target key start
LH: loop header
LB: loop body
LE: loop exit
PB: predicated region body
PF: predicated region fallthrough
CT: control target
= control target key end

     0   :  { %vm32_vm0 = vcmask 261120   ;;  %v184_v3 = vmov 0   ;;  %vm114_vm1 = vcmask 64512   ;;  %s243_s0 = inlined_call_operand.vmem [shape: f32[32,8], index: 0, kind: input, shape index: {}]   ;;  %s244_s1 = inlined_call_operand.vmem [shape: f32[16,32], index: 1, kind: input, shape index: {}]   ;;  %s245_s2 = inlined_call_operand.vmem [shape: f32[16,1], index: 2, kind: input, shape index: {}]   ;;  %s246_s3 = inlined_call_operand.vmem [shape: f32[16,8], index: 3, kind: output, shape index: {}]  }
   0x1   :  { %v16_v0 = vld [vmem:[%s243_s0] sm:$0xff]  ;;  %v17_v1 = vld [vmem:[%s243_s0 + $0x8] sm:$0xff]  ;;  %v18_v2 = vld [vmem:[%s243_s0 + $0x10] sm:$0xff]  ;;  %177 = vset.pattern.permute.xlu0 %v184_v3 }
   0x2   :  { %v168_v4 = vpack.c.bf16 %v17_v1, %v16_v0  ;;  %v19_v5 = vld [vmem:[%s243_s0 + $0x18] sm:$0xff]  ;;  %v14_v6 = vld [vmem:[%s244_s1] sm:$0xff]  ;;  %v21_v9 = vld [vmem:[%s245_s2 + $0x8] sm:$0xff] }
   0x3   :  { %v172_v7 = vpack.c.bf16 %v19_v5, %v18_v2  ;;  %165 = vmatprep.mubr.msk.f32.mxu0 %vm32_vm0, %v14_v6  ;;  %v20_v8 = vld [vmem:[%s245_s2] sm:$0xff]  ;;  %v15_v10 = vld [vmem:[%s244_s1 + $0x8] sm:$0xff] }
   0x4   :  { %169 = vmatprep.subr.bf16.mxu0 %v168_v4  ;;  %24 = vperm.xlu0 %177, %v20_v8  }
   0x5   :  { %171 = vmatpush3.bf16.msra.mxu0 %v168_v4 }
   0x6   :  { %173 = vmatprep.subr.bf16.mxu0 %v172_v7 }
   0x8   :  { %29 = vperm.xlu0 %177, %v21_v9  }
   0x9   :  { %175 = vmatpush3.bf16.msra.mxu0 %v172_v7 }
   0xc   :  { %166 = vmatmul.mubr.msk.f32.vlgmr.msra.gmra.mrb[0].mxu0 %vm32_vm0, %v15_v10 }
  0x83   :  { %v25_v11 = vpop.permute.xlu0 %24 }
  0x87   :  { %v30_v12 = vpop.permute.xlu0 %29 }
  0xdf   :  { %v167_v13 = vpop.f32.mrb[0].mxu0 }
  0xe0   :  { %v111_v14 = vadd.f32 %v167_v13, %v30_v12  ;;  %v105_v15 = vpop.f32.mrb[1].mxu0 }
  0xe1   :  { %v106_v16 = vadd.f32 %v105_v15, %v25_v11 }
  0xe2   :  { %v116_v17 = vsel %vm114_vm1, %v111_v14, -inf }
  0xe3   :  { %v115_v18 = vsel %vm114_vm1, %v106_v16, -inf }
  0xe4   :  { %v117_v19 = vmax.f32 %v115_v18, %v116_v17 }
  0xe6   :  { %v118_v20 = vrot.slane %v117_v19, 4 }
  0xe8   :  { %v119_v21 = vmax.f32 %v117_v19, %v118_v20 }
  0xea   :  { %v120_v22 = vrot.slane %v119_v21, 2 }
  0xec   :  { %v121_v23 = vmax.f32 %v119_v21, %v120_v22 }
  0xee   :  { %v122_v24 = vrot.slane %v121_v23, 1 }
  0xf0   :  { %v123_v25 = vmax.f32 %v121_v23, %v122_v24 }
  0xf2   :  { %v124_v26 = vsub.f32 %v106_v16, %v123_v25  ;;  %v125_v27 = vsub.f32 %v111_v14, %v123_v25 }
  0xf4   :  { %v126_v28 = vmul.f32 1.442695, %v124_v26  ;;  %v128_v29 = vmul.f32 1.442695, %v125_v27 }
  0xf6   :  { %178 = vpow2.f32 %v126_v28 }
  0xf7   :  { %180 = vpow2.f32 %v128_v29 }
 0x100   :  { %v179_v30 = vpop.eup %178 }
 0x101   :  { %v181_v31 = vpop.eup %180  ;;  %v130_v32 = vsel %vm114_vm1, %v179_v30, 0.0 }
 0x102   :  { %v131_v33 = vsel %vm114_vm1, %v181_v31, 0.0 }
 0x103   :  { %v132_v34 = vadd.f32 %v131_v33, %v130_v32 }
 0x105   :  { %v133_v35 = vrot.slane %v132_v34, 4 }
 0x107   :  { %v134_v36 = vadd.f32 %v133_v35, %v132_v34 }
 0x109   :  { %v135_v37 = vrot.slane %v134_v36, 2 }
 0x10b   :  { %v136_v38 = vadd.f32 %v135_v37, %v134_v36 }
 0x10d   :  { %v137_v39 = vrot.slane %v136_v38, 1 }
 0x10f   :  { %v138_v40 = vadd.f32 %v137_v39, %v136_v38 }
 0x111   :  { %182 = vlog2.f32 %v138_v40 }
 0x11b   :  { %v183_v41 = vpop.eup %182 }
 0x11c   :  { %v140_v42 = vmul.f32 0.6931472, %v183_v41 }
 0x11e   :  { %v141_v43 = vsub.f32 %v124_v26, %v140_v42  ;;  %v142_v44 = vsub.f32 %v125_v27, %v140_v42 }
 0x120   :  { %143 = vst.msk [vmem:[%s246_s3] sm:$0xff] %vm114_vm1, %v141_v43  ;;  %144 = vst.msk [vmem:[%s246_s3 + $0x8] sm:$0xff] %vm114_vm1, %v142_v44 }

</bundles_post_ra>
